<compile_context>
chip_gen: v6e
topology: v6e:2x2x1
jax: 0.10.0
libtpu: 0.0.40
codegen_flags: <defaults>
</compile_context>

<pallas_src>
import jax
import jax.numpy as jnp
from jax.experimental import pallas as pl
from jax.experimental.pallas import tpu as pltpu


def _round_up(n, m):
    return ((n + m - 1) // m) * m


def _cdiv(a, b):
    return -(-a // b)


def _pad_axis(a, axis, target):
    pad = target - a.shape[axis]
    if pad == 0:
        return a
    widths = [(0, 0)] * a.ndim
    widths[axis] = (0, pad)
    return jnp.pad(a, widths)


def _ffn_kernel(x_ref, w1_ref, bias1_ref, w2_ref, b2_ref, o_ref, acc_ref):
    # x_ref:     (1, tm, Kp)   activation row tile (mxu dtype, e.g. bf16)
    # w1_ref:    (Kp, tf)      fc1 weight F-chunk (mxu dtype)
    # bias1_ref: (1, 1, tf)    per-batch fc1 bias chunk (f32) = b1 + c @ w1[dim:]
    # w2_ref:    (tf, Np)      fc2 weight F-chunk (mxu dtype)
    # b2_ref:    (1, Np)       fc2 bias (f32)
    # o_ref:     (1, tm, Np)   output tile (original dtype)
    # acc_ref:   (tm, Np)      f32 accumulator scratch (across the F axis)
    f = pl.program_id(2)

    @pl.when(f == 0)
    def _init():
        acc_ref[...] = jnp.zeros_like(acc_ref)

    x = x_ref[0]
    h = jnp.dot(x, w1_ref[...], preferred_element_type=jnp.float32)
    h = h + bias1_ref[0]                 # f32 epilogue (v5e has no bf16 VPU)
    h = jnp.maximum(h, 0.0)              # ReLU
    # dropout: identity in eval/inference mode
    acc_ref[...] += jnp.dot(h.astype(w2_ref.dtype), w2_ref[...],
                            preferred_element_type=jnp.float32)

    @pl.when(f == pl.num_programs(2) - 1)
    def _store():
        o_ref[0] = (acc_ref[...] + b2_ref[...]).astype(o_ref.dtype)


def _plan_tiles(B, S, dim, ff_dim, out_dim, out_itemsize, mxu_itemsize):
    """Pick (Kp, Fp, Np, tm, tf, n_ftiles, vmem_limit) from a per-chip VMEM budget."""
    Kp = _round_up(dim, 128)
    Np = _round_up(out_dim, 128)
    Fp0 = _round_up(ff_dim, 128)

    try:
        vmem_cap = int(pltpu.get_tpu_info().vmem_capacity_bytes)
    except Exception:
        vmem_cap = 128 * 1024 * 1024
    small_vmem = vmem_cap <= 96 * 1024 * 1024          # v7x: 64 MiB / TensorCore
    budget = (48 * 1024 * 1024 if small_vmem
              else min(100 * 1024 * 1024, int(vmem_cap * 0.78)))
    tm_pref = 256 if small_vmem else 512               # big tiles on v5e/v6e

    def bytes_needed(tm, tf, n_ftiles):
        nbuf_w = 1 if n_ftiles == 1 else 2             # resident vs pipelined
        return (2 * tm * Kp * mxu_itemsize             # x tile (double-buffered)
                + 2 * tm * Np * out_itemsize           # out tile (double-buffered)
                + nbuf_w * Kp * tf * mxu_itemsize      # w1 block(s)
                + nbuf_w * tf * Np * mxu_itemsize      # w2 block(s)
                + 2 * tf * 4 + Np * 4                  # bias1 / b2
                + tm * Np * 4                          # f32 accumulator scratch
                + tm * tf * (4 + mxu_itemsize))        # f32 h + its mxu-dtype copy

    # Row tile: multiple of 16 (bf16 packs two sublanes), no larger than needed,
    # and best-effort >= 4 total grid steps (>= 2 per v7x TensorCore).
    tm = max(16, min(tm_pref, _round_up(S, 16)))
    while B * _cdiv(S, tm) < 4 and tm > 16:
        tm = max(16, _round_up(_cdiv(tm, 2), 16))

    tf_candidates = [c for c in (Fp0, 4096, 2048, 1024, 512, 256, 128) if c <= Fp0]
    seen = set()
    tf_candidates = [c for c in tf_candidates if not (c in seen or seen.add(c))]

    tm_sel, tf_sel = None, None
    t = tm
    while tm_sel is None:
        for tf in tf_candidates:
            if bytes_needed(t, tf, _cdiv(Fp0, tf)) <= budget:
                tm_sel, tf_sel = t, tf
                break
        if tm_sel is None:
            if t <= 16:
                tm_sel, tf_sel = 16, 128               # last resort
                break
            t = max(16, _round_up(_cdiv(t, 2), 16))

    Fp = _round_up(Fp0, tf_sel)
    n_ftiles = Fp // tf_sel
    need = bytes_needed(tm_sel, tf_sel, n_ftiles)
    vmem_limit = min(int(vmem_cap * 0.85),
                     max(48 * 1024 * 1024, int(need * 1.5)))
    return Kp, Fp, Np, tm_sel, tf_sel, n_ftiles, vmem_limit


def feed_forward(x, w1, b1, w2, b2, condition=None, *, mxu_dtype=jnp.bfloat16):
    """x: [B, S, dim]; condition: [B, condition_dim] or None. Returns [B, S, dim]."""
    B, S, dim = x.shape
    input_dim, ff_dim = w1.shape
    out_dim = w2.shape[-1]
    b1 = b1.reshape(1, ff_dim)
    b2 = b2.reshape(1, out_dim)

    Kp, Fp, Np, tm, tf, n_ftiles, vmem_limit = _plan_tiles(
        B, S, dim, ff_dim, out_dim,
        jnp.dtype(x.dtype).itemsize, jnp.dtype(mxu_dtype).itemsize)

    # Fold conditioning into a per-batch fc1 bias (no HBM broadcast/concat):
    #   fc1(concat(x, c)) == x @ w1[:dim] + (c @ w1[dim:] + b1)
    w1_x = w1[:dim]
    if condition is not None:
        cond_proj = jnp.dot(condition.astype(mxu_dtype),
                            w1[dim:].astype(mxu_dtype),
                            preferred_element_type=jnp.float32)
        bias1 = b1.astype(jnp.float32) + cond_proj            # [B, ff_dim]
    else:
        bias1 = jnp.broadcast_to(b1.astype(jnp.float32), (B, ff_dim))
    bias1 = bias1[:, None, :]                                 # [B, 1, ff_dim]

    # Lane-dense padding; every pad below is a no-op when already aligned.
    x_p = _pad_axis(x, 2, Kp).astype(mxu_dtype)
    w1_p = _pad_axis(_pad_axis(w1_x, 0, Kp), 1, Fp).astype(mxu_dtype)
    w2_p = _pad_axis(_pad_axis(w2, 0, Fp), 1, Np).astype(mxu_dtype)
    bias1_p = _pad_axis(bias1, 2, Fp)
    b2_p = _pad_axis(b2.astype(jnp.float32), 1, Np)

    S_p = _round_up(S, tm)
    x_p = _pad_axis(x_p, 1, S_p)
    grid = (B, S_p // tm, n_ftiles)

    # Constant-index blocks get a single VMEM buffer (no DMA to hide); F-tiled
    # weight blocks keep the default double buffer so the DMA overlaps compute.
    w_mode = pl.Buffered(1) if n_ftiles == 1 else pl.Buffered(2)

    itemsize = jnp.dtype(mxu_dtype).itemsize
    flops = 2 * B * S_p * (Kp * Fp + Fp * Np)
    bytes_accessed = (x_p.size * itemsize
                      + B * S_p * Np * jnp.dtype(x.dtype).itemsize
                      + w1_p.size * itemsize + w2_p.size * itemsize
                      + bias1_p.size * 4 + b2_p.size * 4)

    out_p = pl.pallas_call(
        _ffn_kernel,
        out_shape=jax.ShapeDtypeStruct((B, S_p, Np), x.dtype),
        grid_spec=pltpu.PrefetchScalarGridSpec(
            num_scalar_prefetch=0,
            grid=grid,
            in_specs=[
                pl.BlockSpec((1, tm, Kp), lambda b, i, f: (b, i, 0)),   # x rows
                pl.BlockSpec((Kp, tf), lambda b, i, f: (0, f),
                             pipeline_mode=w_mode),                     # w1 chunk
                pl.BlockSpec((1, 1, tf), lambda b, i, f: (b, 0, f)),    # bias1 chunk
                pl.BlockSpec((tf, Np), lambda b, i, f: (f, 0),
                             pipeline_mode=w_mode),                     # w2 chunk
                pl.BlockSpec((1, Np), lambda b, i, f: (0, 0),
                             pipeline_mode=pl.Buffered(1)),             # b2 (resident)
            ],
            out_specs=pl.BlockSpec((1, tm, Np), lambda b, i, f: (b, i, 0)),
            scratch_shapes=[pltpu.VMEM((tm, Np), jnp.float32)],
        ),
        compiler_params=pltpu.CompilerParams(
            dimension_semantics=("parallel", "parallel", "arbitrary"),
            vmem_limit_bytes=vmem_limit),
        cost_estimate=pl.CostEstimate(
            flops=flops, transcendentals=0, bytes_accessed=bytes_accessed),
    )(x_p, w1_p, bias1_p, w2_p, b2_p)

    if S_p == S and Np == out_dim:
        return out_p
    return out_p[:, :S, :out_dim]


def init_params(key, dim, ff_dim, condition_dim=None, dtype=jnp.float32):
    """Deterministic nn.Linear-style init (uniform(-1/sqrt(fan_in), 1/sqrt(fan_in)))."""
    input_dim = dim + condition_dim if condition_dim is not None else dim
    k1, k2, k3, k4 = jax.random.split(key, 4)
    lim1 = 1.0 / jnp.sqrt(input_dim)
    lim2 = 1.0 / jnp.sqrt(ff_dim)
    w1 = jax.random.uniform(k1, (input_dim, ff_dim), dtype, -lim1, lim1)
    b1 = jax.random.uniform(k2, (1, ff_dim), dtype, -lim1, lim1)
    w2 = jax.random.uniform(k3, (ff_dim, dim), dtype, -lim2, lim2)
    b2 = jax.random.uniform(k4, (1, dim), dtype, -lim2, lim2)
    return w1, b1, w2, b2


if __name__ == "__main__":
    key = jax.random.PRNGKey(0)
    B, S, dim, ff_dim, condition_dim = 2, 8, 32, 128, 16

    kx, kc, kp = jax.random.split(key, 3)
    x = jax.random.normal(kx, (B, S, dim), jnp.float32)
    condition = jax.random.normal(kc, (B, condition_dim), jnp.float32)
    w1, b1, w2, b2 = init_params(kp, dim, ff_dim, condition_dim)

    out = feed_forward(x, w1, b1, w2, b2, condition)
    out = jax.block_until_ready(out)
    assert out.shape == (B, S, dim)

    # Reference with the same bf16 MXU casting (eval-mode dropout = identity).
    bf = jnp.bfloat16
    cond_b = jnp.broadcast_to(condition[:, None, :], (B, S, condition_dim))
    xin = jnp.concatenate([x, cond_b], axis=-1)
    h = jnp.dot(xin.astype(bf), w1.astype(bf),
                preferred_element_type=jnp.float32) + b1
    h = jnp.maximum(h, 0.0)
    ref = jnp.dot(h.astype(bf), w2.astype(bf),
                  preferred_element_type=jnp.float32) + b2
    assert jnp.allclose(out, ref, atol=1e-3, rtol=1e-3), "mismatch vs bf16 reference"

    # Looser sanity check against the pure-f32 math.
    ref_f32 = jnp.maximum(xin @ w1 + b1, 0.0) @ w2 + b2
    assert jnp.allclose(out, ref_f32, atol=5e-2, rtol=5e-2), "mismatch vs f32 reference"

    # No-condition path sanity check.
    w1n, b1n, w2n, b2n = init_params(kp, dim, ff_dim, None)
    out_nc = jax.block_until_ready(feed_forward(x, w1n, b1n, w2n, b2n))
    ref_nc = jnp.maximum(x @ w1n + b1n, 0.0) @ w2n + b2n
    assert jnp.allclose(out_nc, ref_nc, atol=5e-2, rtol=5e-2), "mismatch (no condition)"

    print("KERNEL_OK")
</pallas_src>

<mosaic_0001>
module attributes {stable_mosaic.version = 11 : i64} {
  func.func @_ffn_kernel(%arg0: i32, %arg1: i32, %arg2: i32, %arg3: memref<1x16x128xbf16, #tpu.memory_space<vmem>>, %arg4: memref<128x128xbf16, #tpu.memory_space<vmem>>, %arg5: memref<1x1x128xf32, #tpu.memory_space<vmem>>, %arg6: memref<128x128xbf16, #tpu.memory_space<vmem>>, %arg7: memref<1x128xf32, #tpu.memory_space<vmem>>, %arg8: memref<1x16x128xf32, #tpu.memory_space<vmem>>, %arg9: memref<16x128xf32, #tpu.memory_space<vmem>>) attributes {dimension_semantics = [#tpu.dimension_semantics<parallel>, #tpu.dimension_semantics<parallel>, #tpu.dimension_semantics<arbitrary>], iteration_bounds = array<i64: 2, 1, 1>, scalar_prefetch = 0 : i64, scratch_operands = 1 : i64, tpu.core_type = #tpu.core_type<tc>, window_params = [{transform_indices = @transform_0, window_bounds = array<i64: 1, 16, 128>}, {pipeline_mode = #tpu.pipeline_mode<synchronous>, transform_indices = @transform_1, window_bounds = array<i64: 128, 128>}, {transform_indices = @transform_2, window_bounds = array<i64: 1, 1, 128>}, {pipeline_mode = #tpu.pipeline_mode<synchronous>, transform_indices = @transform_3, window_bounds = array<i64: 128, 128>}, {pipeline_mode = #tpu.pipeline_mode<synchronous>, transform_indices = @transform_4, window_bounds = array<i64: 1, 128>}, {transform_indices = @transform_5, window_bounds = array<i64: 1, 16, 128>}]} {
    %c0_i32 = arith.constant 0 : i32
    %0 = arith.cmpi eq, %arg2, %c0_i32 : i32
    %1 = arith.extui %0 : i1 to i32
    %c0_i32_0 = arith.constant 0 : i32
    %2 = arith.cmpi ne, %1, %c0_i32_0 : i32
    scf.if %2 {
      %cst_18 = arith.constant 0.000000e+00 : f32
      %22 = vector.broadcast %cst_18 : f32 to vector<16x128xf32>
      %c0_19 = arith.constant 0 : index
      %c0_20 = arith.constant 0 : index
      %23 = vector.load %arg9[%c0_19, %c0_20] : memref<16x128xf32, #tpu.memory_space<vmem>>, vector<16x128xf32>
      tpu.vector_store %arg9[%c0_19, %c0_20], %22 {strides = array<i32>} : memref<16x128xf32, #tpu.memory_space<vmem>>, vector<16x128xf32>,
    } else {
    }
    %c0 = arith.constant 0 : index
    %c0_1 = arith.constant 0 : index
    %c0_2 = arith.constant 0 : index
    %3 = vector.load %arg3[%c0, %c0_1, %c0_2] : memref<1x16x128xbf16, #tpu.memory_space<vmem>>, vector<1x16x128xbf16>
    %4 = vector.shape_cast %3 : vector<1x16x128xbf16> to vector<16x128xbf16>
    %c0_3 = arith.constant 0 : index
    %c0_4 = arith.constant 0 : index
    %5 = vector.load %arg4[%c0_3, %c0_4] : memref<128x128xbf16, #tpu.memory_space<vmem>>, vector<128x128xbf16>
    %cst = arith.constant dense<0.000000e+00> : vector<16x128xf32>
    %6 = tpu.matmul %4, %5, %cst {dimension_numbers = #tpu.dot_dimension_numbers<[1], [0], [0], [1], [0, 0, 1, 1], [], []>} : vector<16x128xbf16>, vector<128x128xbf16>, vector<16x128xf32> -> vector<16x128xf32>
    %c0_5 = arith.constant 0 : index
    %c0_6 = arith.constant 0 : index
    %c0_7 = arith.constant 0 : index
    %7 = vector.load %arg5[%c0_5, %c0_6, %c0_7] : memref<1x1x128xf32, #tpu.memory_space<vmem>>, vector<1x1x128xf32>
    %8 = vector.shape_cast %7 : vector<1x1x128xf32> to vector<1x128xf32>
    %9 = vector.broadcast %8 : vector<1x128xf32> to vector<16x128xf32>
    %10 = arith.addf %6, %9 : vector<16x128xf32>
    %cst_8 = arith.constant 0.000000e+00 : f32
    %11 = vector.broadcast %cst_8 : f32 to vector<16x128xf32>
    %12 = arith.maximumf %10, %11 : vector<16x128xf32>
    %c0_9 = arith.constant 0 : index
    %c0_10 = arith.constant 0 : index
    %13 = vector.load %arg9[%c0_9, %c0_10] : memref<16x128xf32, #tpu.memory_space<vmem>>, vector<16x128xf32>
    %14 = arith.truncf %12 : vector<16x128xf32> to vector<16x128xbf16>
    %c0_11 = arith.constant 0 : index
    %c0_12 = arith.constant 0 : index
    %15 = vector.load %arg6[%c0_11, %c0_12] : memref<128x128xbf16, #tpu.memory_space<vmem>>, vector<128x128xbf16>
    %cst_13 = arith.constant dense<0.000000e+00> : vector<16x128xf32>
    %16 = tpu.matmul %14, %15, %cst_13 {dimension_numbers = #tpu.dot_dimension_numbers<[1], [0], [0], [1], [0, 0, 1, 1], [], []>} : vector<16x128xbf16>, vector<128x128xbf16>, vector<16x128xf32> -> vector<16x128xf32>
    %17 = arith.addf %13, %16 : vector<16x128xf32>
    %c0_14 = arith.constant 0 : index
    %c0_15 = arith.constant 0 : index
    %18 = vector.load %arg9[%c0_14, %c0_15] : memref<16x128xf32, #tpu.memory_space<vmem>>, vector<16x128xf32>
    tpu.vector_store %arg9[%c0_14, %c0_15], %17 {strides = array<i32>} : memref<16x128xf32, #tpu.memory_space<vmem>>, vector<16x128xf32>,
    %c0_i32_16 = arith.constant 0 : i32
    %19 = arith.cmpi eq, %arg2, %c0_i32_16 : i32
    %20 = arith.extui %19 : i1 to i32
    %c0_i32_17 = arith.constant 0 : i32
    %21 = arith.cmpi ne, %20, %c0_i32_17 : i32
    scf.if %21 {
      %c0_18 = arith.constant 0 : index
      %c0_19 = arith.constant 0 : index
      %22 = vector.load %arg9[%c0_18, %c0_19] : memref<16x128xf32, #tpu.memory_space<vmem>>, vector<16x128xf32>
      %c0_20 = arith.constant 0 : index
      %c0_21 = arith.constant 0 : index
      %23 = vector.load %arg7[%c0_20, %c0_21] : memref<1x128xf32, #tpu.memory_space<vmem>>, vector<1x128xf32>
      %24 = vector.broadcast %23 : vector<1x128xf32> to vector<16x128xf32>
      %25 = arith.addf %22, %24 : vector<16x128xf32>
      %c0_22 = arith.constant 0 : index
      %c0_23 = arith.constant 0 : index
      %c0_24 = arith.constant 0 : index
      %26 = vector.load %arg8[%c0_22, %c0_23, %c0_24] : memref<1x16x128xf32, #tpu.memory_space<vmem>>, vector<1x16x128xf32>
      %27 = vector.shape_cast %26 : vector<1x16x128xf32> to vector<16x128xf32>
      %28 = vector.shape_cast %25 : vector<16x128xf32> to vector<1x16x128xf32>
      tpu.vector_store %arg8[%c0_22, %c0_23, %c0_24], %28 {strides = array<i32>} : memref<1x16x128xf32, #tpu.memory_space<vmem>>, vector<1x16x128xf32>,
    } else {
    }
    return
  }
  func.func @transform_0(%arg0: i32, %arg1: i32, %arg2: i32) -> (i32, i32, i32) {
    %c0_i32 = arith.constant 0 : i32
    %c0_i32_0 = arith.constant 0 : i32
    return %arg0, %arg1, %c0_i32 : i32, i32, i32
  }
  func.func @transform_1(%arg0: i32, %arg1: i32, %arg2: i32) -> (i32, i32) {
    %c0_i32 = arith.constant 0 : i32
    %c0_i32_0 = arith.constant 0 : i32
    return %c0_i32, %arg2 : i32, i32
  }
  func.func @transform_2(%arg0: i32, %arg1: i32, %arg2: i32) -> (i32, i32, i32) {
    %c0_i32 = arith.constant 0 : i32
    %c0_i32_0 = arith.constant 0 : i32
    return %arg0, %c0_i32, %arg2 : i32, i32, i32
  }
  func.func @transform_3(%arg0: i32, %arg1: i32, %arg2: i32) -> (i32, i32) {
    %c0_i32 = arith.constant 0 : i32
    %c0_i32_0 = arith.constant 0 : i32
    return %arg2, %c0_i32 : i32, i32
  }
  func.func @transform_4(%arg0: i32, %arg1: i32, %arg2: i32) -> (i32, i32) {
    %c0_i32 = arith.constant 0 : i32
    %c0_i32_0 = arith.constant 0 : i32
    %c0_i32_1 = arith.constant 0 : i32
    return %c0_i32, %c0_i32_0 : i32, i32
  }
  func.func @transform_5(%arg0: i32, %arg1: i32, %arg2: i32) -> (i32, i32, i32) {
    %c0_i32 = arith.constant 0 : i32
    %c0_i32_0 = arith.constant 0 : i32
    return %arg0, %arg1, %c0_i32 : i32, i32, i32
  }
}

</mosaic_0001>

<bundles_post_ra>
// kernel: tpu_custom_call.1
= control target key start
LH: loop header
LB: loop body
LE: loop exit
PB: predicated region body
PF: predicated region fallthrough
CT: control target
= control target key end

     0   :  { %s1357_s0 = inlined_call_operand.hbm [shape: bf16[2,16,128], index: 0, kind: input, shape index: {}]   ;;  %s1358_s1 = inlined_call_operand.hbm [shape: bf16[128,128], index: 1, kind: input, shape index: {}]   ;;  %s1359_s2 = inlined_call_operand.vmem [shape: f32[2,1,128], index: 2, kind: input, shape index: {}]   ;;  %s1360_s3 = inlined_call_operand.hbm [shape: bf16[128,128], index: 3, kind: input, shape index: {}]   ;;  %s1361_s4 = inlined_call_operand.vmem [shape: f32[1,128], index: 4, kind: input, shape index: {}]   ;;  %s1362_s5 = inlined_call_operand.hbm [shape: f32[2,16,128], index: 5, kind: output, shape index: {}]  }
   0x1   :  { %1365 = sst [smem:[#allocation13_spill]] %s1358_s1 }
   0x2   :  { %10 = vsyncpa [#allocation4], 0 }
   0x3   :  { %12 = vsyncpa [#allocation4 + $0x1], 0 }
   0x4   :  { %13 = vsyncpa [#allocation7], 0 }
   0x5   :  { %14 = vsyncpa [#allocation5], 0 }
   0x6   :  { %16 = vsyncpa [#allocation5 + $0x1], 0  ;;  %s1148_s18 = smov 0   ;;  %s1150_s19 = smov 0  }
   0x7   :  { %s1152_s20 = smov 0   ;;  %s1154_s21 = smov 0  }
   0x8   :  { %s1156_s22 = smov 0   ;;  %s1158_s23 = smov 0  }
   0x9 LB: > { %s738_s24 = sadd.s32 4294967295, %s1106_s23   ;;  %s739_s25 = sadd.s32 4294967294, %s1106_s23   ;;  %s1106_s23 = sphi %s1158_s23, %s22_s23   ;;  %s1102_s22 = sphi %s1156_s22, %s1383_s22   ;;  %s1098_s21 = sphi %s1154_s21, %s1382_s21   ;;  %s1094_s20 = sphi %s1152_s20, %s1381_s20   ;;  %s1090_s19 = sphi %s1150_s19, %s1380_s19   ;;  %s1086_s18 = sphi %s1148_s18, %s1379_s18  }
   0xa   : > { %p63_p0 = scmp.ne.s32.totalorder %s1090_s19, %s1086_s18  ;;  %p1182_p1 = scmp.eq.s32.totalorder %s738_s24, 0 }
   0xb   : > { %p1186_p2 = scmp.eq.s32.totalorder %s738_s24, 1  ;;  %p196_p3 = scmp.eq.s32.totalorder %s739_s25, 1 }
   0xc   : > { %p1192_p4 = por %p1182_p1, %p63_p0  ;;  %p740_p5 = scmp.ge.s32.totalorder %s1106_s23, 1 }
   0xd   : > { %p1197_p6 = por %p196_p3, %p63_p0  ;;  %p203_p7 = scmp.lt.s32.totalorder %s1106_s23, 3 }
   0xe   : > { %s1108_s6 = smov [#allocation6]   ;;  %s1109_s9 = smov [#allocation8]  }
   0xf   : > { %s1369_s29 = scalar_select %p1197_p6, 1, 0 }
  0x10   : > { %p1202_p8 = pnand %p740_p5, %p203_p7  ;;  %s217_s7 = sshll.u32 %s1108_s6, 4  ;;  %s218_s7 = int_to_ptr.vmem [resolvable:$true] %s217_s7 }
  0x11   : > { %s233_s10 = sshll.u32 %s1109_s9, 4  ;;  %s953_s11 = scalar_lea.vmem %s218_s7, 1024  ;;  %s234_s10 = int_to_ptr.vmem [resolvable:$true] %s233_s10 }
  0x12   : > { %p848_p9 = pneg %p1202_p8  ;;  %p954_p13 = scmp.ne.s32.totalorder %s218_s7, %s953_s11 }
  0x13   : > { %p961_p5 = scmp.lt.s32.totalorder %s218_s7, %s218_s7  ;;  %p962_p7 = scmp.lt.s32.totalorder %s953_s11, %s953_s11 }
  0x14   : > { %p1211_p11 = pnand %p848_p9, %p1182_p1 }
  0x15   : > { %p963_p10 = por %p962_p7, %p961_p5 }
  0x16   : > { %p944_p12 = pneg %p1211_p11 }
  0x18   : > { %p956_p0 = pnand %p954_p13, %p944_p12 }
  0x1a   : > { %p957_p3 = pneg %p956_p0 }
  0x1c   : > { %p964_p9 = pnand %p963_p10, %p957_p3 }
  0x1e   : > { %967 = shalt.err (!%p964_p9)
}
  0x1f   : > { %s1363_s12 = smov 64   ;;  %s1364_s13 = smov 4  }
  0x20   : > { %s1372_s1 = sld [smem:[#allocation13_spill]]  ;;  %s979_s16 = scalar_lea.vmem %s234_s10, 1024 }
  0x21   : > { %p980_p13 = scmp.ne.s32.totalorder %s234_s10, %s979_s16  ;;  %p987_p10 = scmp.lt.s32.totalorder %s234_s10, %s234_s10 }
  0x22   : > { %p988_p3 = scmp.lt.s32.totalorder %s979_s16, %s979_s16 }
  0x23   : > { %p982_p0 = pnand %p980_p13, %p944_p12 }
  0x24   : > { %p989_p7 = por %p988_p3, %p987_p10 }
  0x25   : > { %p983_p5 = pneg %p982_p0 }
  0x26   : > { %851 = dma.hbm_to_vmem [thread:$0]  (!%p1211_p11), %s1372_s1, 1024, %s218_s7, [#allocation7], %s1363_s12, %s1363_s12, %s1364_s13  }
  0x27   : > { %p990_p9 = pnand %p989_p7, %p983_p5 }
  0x29   : > { %993 = shalt.err (!%p990_p9)
}
  0x2a   : > { %854 = dma.hbm_to_vmem [thread:$0]  (!%p1211_p11), %s1360_s3, 1024, %s234_s10, [#allocation7], %s1363_s12, %s1363_s12, %s1364_s13  }
  0x2b   : > { %s41_s25 = sadd.s32 1, %s1102_s22  ;;  %s50_s6 = sadd.s32 1, %s1094_s20 }
  0x2c   : > { %p43_p12 = scmp.ge.s32.totalorder %s41_s25, 2  ;;  %p57_p13 = scmp.ne.s32.totalorder %s1094_s20, %s1090_s19 }
  0x2d   : > { %p58_p0 = scmp.eq.s32.totalorder %s1106_s23, 0  ;;  %p865_p5 = scmp.lt.s32.totalorder %s1106_s23, 2 }
  0x2e   : > { %s1385_s25 = smov (%p43_p12, %s41_s25), 0  ;;  %p1249_p3 = por %p1186_p2, %p57_p13 }
  0x2f   : > { %p59_p10 = por %p58_p0, %p57_p13  ;;  %s45_s8 = ssub.s32 %s1102_s22, %s1385_s25 }
  0x30   : > { %s250_s9 = sand.u32 1, %s1094_s20   ;;  %p48_p7 = scmp.eq.s32.totalorder %s45_s8, 0 }
  0x31   : > { %s744_s10 = sshll.u32 %s250_s9, 3  ;;  %s776_s11 = sshll.u32 %s1102_s22, 7 }
  0x32   : > { %s1258_s14 = scalar_select %p48_p7, %s1094_s20, %s50_s6  }
  0x33   : > { %s262_s17 = scalar_lea.hbm %s1357_s0, %s776_s11  ;;  %s254_s24 = scalar_lea.vmem [#allocation3], %s744_s10 }
  0x34   : > { %s263_s12 = sshll.u32 %s254_s24, 4  ;;  %p1265_p11 = pnand %p865_p5, %p59_p10  ;;  %s264_s12 = int_to_ptr.vmem [resolvable:$true] %s263_s12 }
  0x35   : > { %s251_s13 = scalar_lea.sflag [#allocation4], %s250_s9  ;;  %s1007_s8 = scalar_lea.vmem %s264_s12, 128 }
  0x36   : > { %p996_p2 = pneg %p1265_p11  ;;  %p1008_p9 = scmp.ne.s32.totalorder %s264_s12, %s1007_s8 }
  0x37   : > { %s1112_s6 = smov [#allocation3]  }
  0x38   : > { %p1010_p12 = pnand %p1008_p9, %p996_p2  ;;  %s1012_s1 = sshll.u32 %s1112_s6, 4  ;;  %s1013_s1 = int_to_ptr.vmem [resolvable:$false] %s1012_s1 }
  0x39   : > { %s1014_s11 = scalar_lea.vmem %s1013_s1, 256  ;;  %p1015_p0 = scmp.lt.s32.totalorder %s264_s12, %s1013_s1 }
  0x3a   : > { %p1011_p13 = pneg %p1010_p12  ;;  %p1016_p7 = scmp.lt.s32.totalorder %s1014_s11, %s1007_s8 }
  0x3c   : > { %p1017_p6 = por %p1016_p7, %p1015_p0 }
  0x3e   : > { %p1018_p5 = pnand %p1017_p6, %p1011_p13 }
  0x40   : > { %1021 = shalt.err (!%p1018_p5)
}
  0x41   : > { %s1375_s10 = smov 4   ;;  %s1376_s15 = smov 64  }
  0x42   : > { %858 = dma.hbm_to_vmem [thread:$0]  (!%p1265_p11), %s262_s17, 128, %s264_s12, %s251_s13, %s1376_s15, %s1376_s15, %s1375_s10  }
  0x43   : > { %284 = sbr.rel (%p1202_p8) target bundleno = 525 (0x20d), region = 40  ;;  %s1279_s9 = sand.u32 (!%p1202_p8), 1, %s1090_s19  }
  0x44   : > { %s748_s1 = sshll.u32 (!%p1202_p8), %s1279_s9, 3  ;;  %s287_s16 = scalar_lea.sflag (!%p1202_p8), [#allocation4], %s1279_s9 }
  0x45   : > { %s1283_s24 = scalar_lea.vmem (!%p1202_p8), [#allocation3], %s748_s1 }
  0x48   : > { %1073 = dma.done.wait (%p1192_p4), %s287_s16, 128  }
  0x49   : > { %1075 = vsyncadd (%p1192_p4), %s287_s16, 4294967168 }
  0x4a   : > { %1077 = dma.done.wait (%p1182_p1), [#allocation7], 2048  }
  0x4b   : > { %1079 = vsyncadd (%p1182_p1), [#allocation7], 4294965248  ;;  %v1113_v0 = vmov 0.0   ;;  %vm1114_vm0 = vmmov 0   ;;  %v925_v1 = vld [vmem:[#allocation6 + $0x38] sm:$0xff]   ;;  %v926_v2 = vld [vmem:[#allocation6 + $0x30] sm:$0xff]  }
  0x4c   : > { %796 = vmatprep.subr.bf16.mxu0 %v1113_v0  ;;  %812 = vmatprep.mubr.msk.bf16.mxu0 %vm1114_vm0, %v1113_v0  ;;  %v927_v3 = vld [vmem:[#allocation6 + $0x28] sm:$0xff]   ;;  %v934_v4 = vld [vmem:[#allocation8 + $0x38] sm:$0xff]   ;;  %v928_v5 = vld [vmem:[#allocation6 + $0x20] sm:$0xff]   ;;  %p332_p1 = scmp.lt.s32.totalorder %s1098_s21, 1  ;;  %s751_s13 = sshll.u32 %s1279_s9, 4 }
  0x4d   : > { %816 = vmatprep.subr.bf16.mxu1 %v1113_v0  ;;  %832 = vmatprep.mubr.msk.bf16.mxu1 %vm1114_vm0, %v1113_v0  ;;  %v935_v6 = vld [vmem:[#allocation8 + $0x30] sm:$0xff]   ;;  %v929_v7 = vld [vmem:[#allocation6 + $0x18] sm:$0xff]   ;;  %v936_v8 = vld [vmem:[#allocation8 + $0x28] sm:$0xff]   ;;  %s330_s8 = scalar_lea.vmem [#allocation9], %s751_s13  ;;  %s777_s11 = sshll.u32 %s1098_s21, 8 }
  0x4e   : > { %797 = vmatpush3.bf16.msra.mxu0 %v925_v1  ;;  %817 = vmatpush3.bf16.msra.mxu1 %v934_v4  ;;  %v930_v9 = vld [vmem:[#allocation6 + $0x10] sm:$0xff]   ;;  %v937_v10 = vld [vmem:[#allocation8 + $0x20] sm:$0xff]   ;;  %v931_v11 = vld [vmem:[#allocation6 + $0x8] sm:$0xff]   ;;  %s333_s26 = scalar_select %p332_p1, %s1098_s21, 1 }
  0x4f   : > { %798 = vmatprep.subr.bf16.mxu0 %v1113_v0  ;;  %818 = vmatprep.subr.bf16.mxu1 %v1113_v0  ;;  %v938_v12 = vld [vmem:[#allocation8 + $0x18] sm:$0xff]   ;;  %v932_v13 = vld [vmem:[#allocation6] sm:$0xff]   ;;  %v939_v15 = vld [vmem:[#allocation8 + $0x10] sm:$0xff]   ;;  %s613_s6 = sshll.u32 %s330_s8, 4  ;;  %s1309_s1 = scalar_lea.hbm %s1362_s5, %s777_s11  ;;  %s1304_s6 = int_to_ptr.vmem [resolvable:$true] %s613_s6 }
  0x50   : > { %v933_v14 = vld [vmem:[%s1283_s24] sm:$0xff]   ;;  %v940_v16 = vld [vmem:[#allocation8 + $0x8] sm:$0xff]   ;;  %v941_v17 = vld [vmem:[#allocation8] sm:$0xff]   ;;  %s337_s12 = scalar_lea.vmem %s1359_s2, %s333_s26  ;;  %s598_s16 = scalar_lea.sflag [#allocation5], %s1279_s9 }
  0x51   : > { %v752_v18 = vld [vmem:[%s337_s12] ss:$0 sm:$0xff]  ;;  %s1022_s24 = scalar_lea.vmem %s1304_s6, 256  ;;  %s1115_s21 = smov [#allocation9]  }
  0x52   : > { %799 = vmatpush3.bf16.msra.mxu0 %v926_v2  ;;  %819 = vmatpush3.bf16.msra.mxu1 %v935_v6  ;;  %v770_v28 = vld [vmem:[%s1361_s4] ss:$0 sm:$0xff]  ;;  %p1023_p4 = scmp.ne.s32.totalorder %s1304_s6, %s1022_s24  ;;  %s1026_s26 = sshll.u32 %s1115_s21, 4  ;;  %s1027_s26 = int_to_ptr.vmem [resolvable:$false] %s1026_s26 }
  0x53   : > { %800 = vmatprep.subr.bf16.mxu0 %v1113_v0  ;;  %820 = vmatprep.subr.bf16.mxu1 %v1113_v0  ;;  %s1028_s28 = scalar_lea.vmem %s1027_s26, 512  ;;  %p1029_p10 = scmp.lt.s32.totalorder %s1304_s6, %s1027_s26 }
  0x54   : > { %p1024_p6 = pnand %p1023_p4, %p1249_p3  ;;  %p1030_p11 = scmp.lt.s32.totalorder %s1028_s28, %s1022_s24 }
  0x56   : > { %801 = vmatpush3.bf16.msra.mxu0 %v927_v3  ;;  %821 = vmatpush3.bf16.msra.mxu1 %v936_v8  ;;  %p1025_p8 = pneg %p1024_p6  ;;  %p1031_p2 = por %p1030_p11, %p1029_p10 }
  0x57   : > { %802 = vmatprep.subr.bf16.mxu0 %v1113_v0  ;;  %822 = vmatprep.subr.bf16.mxu1 %v1113_v0 }
  0x58   : > { %p1032_p9 = pnand %p1031_p2, %p1025_p8 }
  0x5a   : > { %803 = vmatpush3.bf16.msra.mxu0 %v928_v5  ;;  %823 = vmatpush3.bf16.msra.mxu1 %v937_v10 }
  0x5b   : > { %804 = vmatprep.subr.bf16.mxu0 %v1113_v0  ;;  %824 = vmatprep.subr.bf16.mxu1 %v1113_v0 }
  0x5e   : > { %805 = vmatpush3.bf16.msra.mxu0 %v929_v7  ;;  %825 = vmatpush3.bf16.msra.mxu1 %v938_v12 }
  0x5f   : > { %806 = vmatprep.subr.bf16.mxu0 %v1113_v0  ;;  %826 = vmatprep.subr.bf16.mxu1 %v1113_v0 }
  0x62   : > { %807 = vmatpush3.bf16.msra.mxu0 %v930_v9  ;;  %827 = vmatpush3.bf16.msra.mxu1 %v939_v15 }
  0x63   : > { %808 = vmatprep.subr.bf16.mxu0 %v1113_v0  ;;  %828 = vmatprep.subr.bf16.mxu1 %v1113_v0 }
  0x66   : > { %809 = vmatpush3.bf16.msra.mxu0 %v931_v11  ;;  %829 = vmatpush3.bf16.msra.mxu1 %v940_v16 }
  0x67   : > { %810 = vmatprep.subr.bf16.mxu0 %v1113_v0  ;;  %830 = vmatprep.subr.bf16.mxu1 %v1113_v0 }
  0x6a   : > { %811 = vmatpush3.bf16.msra.mxu0 %v932_v13  ;;  %831 = vmatpush3.bf16.msra.mxu1 %v941_v17 }
  0x6d   : > { %813 = vmatmul.mubr.bf16.vlgmr.msra.gmra.mxu0 %v933_v14 }
 0x12d   : > { %v460_v19 = vpop.f32.mrf.mxu0 }
 0x12e   : > { %v461_v21 = vadd.f32 %v752_v18, %v460_v19 }
 0x12f   : > { %v814_v20 = vpop.f32.mrf.mxu0 }
 0x130   : > { %v467_v25 = vmax.f32 %v461_v21, 0.0 }
 0x131   : > { %v463_v22 = vpop.f32.mrf.mxu0 }
 0x132   : > { %v464_v23 = vadd.f32 %v752_v18, %v463_v22 }
 0x133   : > { %v815_v24 = vpop.f32.mrf.mxu0 }
 0x134   : > { %v468_v26 = vmax.f32 %v464_v23, 0.0 }
 0x136   : > { %v471_v27 = vpack.c.bf16 %v468_v26, %v467_v25 }
 0x138   : > { %833 = vmatmul.mubr.bf16.vlgmr.msra.gmra.mxu1 %v471_v27 }
 0x1f8   : > { %v570_v29 = vpop.f32.mrf.mxu1 }
 0x1f9   : > { %v593_v30 = vadd.f32 %v770_v28, %v570_v29 }
 0x1fa   : > { %v834_v31 = vpop.f32.mrf.mxu1 }
 0x1fb   : > { %595 = vst [vmem:[%s330_s8] sm:$0xff] %v593_v30 }
 0x1fc   : > { %v573_v32 = vpop.f32.mrf.mxu1 }
 0x1fd   : > { %v594_v33 = vadd.f32 %v770_v28, %v573_v32 }
 0x1fe   : > { %v835_v34 = vpop.f32.mrf.mxu1 }
 0x1ff   : > { %596 = vst [vmem:[%s330_s8 + $0x8] sm:$0xff] %v594_v33 }
 0x200   : > { %1035 = shalt.err (!%p1032_p9)
}
 0x201   : > { %s1036_s30 = scalar_lea.hbm %s1309_s1, 256  ;;  %s1040_s17 = scalar_lea.hbm %s1362_s5, 512 }
 0x202   : > { %p1037_p12 = scmp.ne.s32.totalorder %s1309_s1, %s1036_s30  ;;  %p1041_p7 = scmp.lt.s32.totalorder %s1309_s1, %s1362_s5 }
 0x203   : > { %p1042_p5 = scmp.lt.s32.totalorder %s1040_s17, %s1036_s30 }
 0x204   : > { %p1038_p13 = pnand %p1037_p12, %p1249_p3 }
 0x205   : > { %p1043_p1 = por %p1042_p5, %p1041_p7 }
 0x206   : > { %p1039_p0 = pneg %p1038_p13 }
 0x208   : > { %p1044_p4 = pnand %p1043_p1, %p1039_p0 }
 0x20a   : > { %1047 = shalt.err (!%p1044_p4)
}
 0x20b   : > { %s1116_s11 = smov 128   ;;  %s1117_s10 = smov 8  }
 0x20c   : > { %846 = dma.vmem_to_hbm [thread:$0]  (%p1249_p3), %s1304_s6, 256, %s1309_s1, %s598_s16, %s1116_s11, %s1116_s11, %s1117_s10  }
 0x20d PF: > { %s628_s15 = sand.u32 1, %s1086_s18   ;;  %p1377_p6 = scmp.ne.s32.totalorder %s1369_s29, 0 }
 0x20e   : > { %p1378_p8 = scmp.ge.s32.totalorder %s1106_s23, 2  ;;  %s629_s24 = scalar_lea.sflag [#allocation5], %s628_s15 }
 0x210   : > { %p860_p10 = pnand %p1378_p8, %p1377_p6 }
 0x212   : > { %p861_p11 = pneg %p860_p10 }
 0x214   : > { %1081 = dma.done.wait (%p861_p11), %s629_s24, 256  }
 0x215   : > { %1083 = vsyncadd (%p861_p11), %s629_s24, 4294967040  ;;  %s22_s23 = sadd.s32 1, %s1106_s23   ;;  %s1379_s18 = smov %s1090_s19 }
 0x216   : > { %p19_p2 = scmp.ge.s32.totalorder %s22_s23, 4   ;;  %s1380_s19 = smov %s1094_s20 }
 0x217   : > { %s1381_s20 = smov %s1258_s14  ;;  %s1382_s21 = smov %s1102_s22 }
 0x218   : > { %s1383_s22 = smov %s1385_s25  ;;  %21 = sbr.rel (!%p19_p2) target bundleno = 9 (0x9), region = 106 }
 0x21d   :  { %634 = vsyncpa [#allocation4], 1 }
 0x21e   :  { %636 = vsyncpa [#allocation4 + $0x1], 1 }
 0x21f   :  { %637 = vsyncpa [#allocation7], 1 }
 0x220   :  { %638 = vsyncpa [#allocation5], 1 }
 0x221   :  { %640 = vsyncpa [#allocation5 + $0x1], 1 }

</bundles_post_ra>
